<compile_context>
chip_gen: v6e
topology: v6e:2x2x1
jax: 0.10.0
libtpu: 0.0.40
codegen_flags: <defaults>
</compile_context>

<pallas_src>
import jax
import jax.numpy as jnp
from jax.experimental import pallas as pl
from jax.experimental.pallas import tpu as pltpu


# ----------------------------------------------------------------------------
# Generation-aware VMEM budget (queried once at import time).
# ----------------------------------------------------------------------------
def _query_vmem_capacity_bytes():
    try:
        return int(pltpu.get_tpu_info().vmem_capacity_bytes)
    except Exception:
        return 64 * 1024 * 1024  # conservative fallback (v7x per-TC VMEM)


_VMEM_CAPACITY = _query_vmem_capacity_bytes()
# Live-tile budget: ~32 MiB on v7x (64 MiB physical), up to 48 MiB on v5e/v6e.
_VMEM_BUDGET = min(_VMEM_CAPACITY // 2, 48 * 1024 * 1024)
# Scoped-VMEM limit handed to Mosaic (v5e default is only 16 MiB).
_VMEM_LIMIT = int(min(_VMEM_BUDGET + 8 * 1024 * 1024, _VMEM_CAPACITY * 3 // 4))


def _round_up(v, m):
    return (v + m - 1) // m * m


# ----------------------------------------------------------------------------
# Kernels
# ----------------------------------------------------------------------------
def _merge_kernel(x_ref, w_ref, b_ref, o_ref):
    # x_ref: (Cin, t_hw)  w_ref: (Cout_p, Cin)  b_ref: (Cout_p, 1)
    # o_ref: (Cout_p, t_hw)
    acc = jnp.dot(w_ref[...], x_ref[...], preferred_element_type=jnp.float32)
    o_ref[...] = (acc + b_ref[...]).astype(o_ref.dtype)


def _merge_kernel_kacc(x_ref, w_ref, b_ref, o_ref, acc_ref):
    # Reduction over Cin tiles (grid axis 2, "arbitrary").
    k = pl.program_id(2)

    @pl.when(k == 0)
    def _():
        acc_ref[...] = jnp.zeros_like(acc_ref)

    acc_ref[...] += jnp.dot(w_ref[...], x_ref[...],
                            preferred_element_type=jnp.float32)

    @pl.when(k == pl.num_programs(2) - 1)
    def _():
        o_ref[...] = (acc_ref[...] + b_ref[...]).astype(o_ref.dtype)


# ----------------------------------------------------------------------------
# Tile selection
# ----------------------------------------------------------------------------
def _pick_tiles(n, hw, cin, cout_p):
    """Return (t_hw, t_k). t_k == cin means no Cin-reduction grid axis."""
    dt = 4  # float32
    cout_sub = _round_up(cout_p, 8)

    # --- Cin tiling: bound the resident (double-buffered) weight slab. ------
    t_k = cin
    w_fixed = 2 * cout_sub * max(_round_up(cin, 128), 128) * dt
    if w_fixed > _VMEM_BUDGET // 4 and cin % 128 == 0:
        cap_k = max(128, (_VMEM_BUDGET // 4) // (2 * cout_sub * dt) // 128 * 128)
        t_k = 128
        for cand in range(cap_k, 127, -128):
            if cin % cand == 0:
                t_k = cand
                break
        w_fixed = 2 * cout_sub * t_k * dt
    # TODO(synk): a Cin that is both huge and not a multiple of 128 would need
    # zero-padding of x/weight along Cin before using the reduction path.

    reduction = t_k != cin
    cin_sub = _round_up(t_k, 8)

    # --- HW (lane) tiling from the remaining budget. -------------------------
    bias_fixed = 2 * cout_sub * 128 * dt  # (Cout_p, 1) pads to (cout_sub, 128)
    per_lane = dt * (2 * cin_sub + 2 * cout_sub + (cout_sub if reduction else 0))
    cap = max(128, (_VMEM_BUDGET - w_fixed - bias_fixed) // per_lane // 128 * 128)

    # Megacore / 2-TC chips: make sure the grid has at least 2 blocks.
    if n == 1 and hw > 128:
        cap = min(cap, _round_up(pl.cdiv(hw, 2), 128))

    if hw <= cap:
        return hw, t_k  # full-extent lane block: always layout-legal
    # Prefer a tile that divides HW evenly (unmasked, lane-dense stores).
    for cand in range(min(cap, _round_up(hw, 128)), 127, -128):
        if hw % cand == 0:
            return cand, t_k
    return cap, t_k  # fallback: ragged last tile (OOB writes dropped)


# ----------------------------------------------------------------------------
# Forward
# ----------------------------------------------------------------------------
@jax.jit
def merge_forward(x_nchw, weight, bias):
    """1x1 conv with bias (the whole Merge forward).

    x_nchw : (N, Cin, H, W) float32
    weight : (Cout, Cin) or (Cout, Cin, 1, 1)  (PyTorch Conv2d 1x1 weight)
    bias   : (Cout,)
    returns: (N, Cout, H, W) float32
    """
    N, Cin, H, W = x_nchw.shape
    if weight.ndim == 4:
        weight = weight.reshape(weight.shape[0], weight.shape[1])
    Cout = weight.shape[0]
    HW = H * W

    x = x_nchw.reshape(N, Cin, HW)  # free, contiguous reshape
    w = weight.astype(x.dtype)      # (Cout, Cin)
    b = bias.astype(x.dtype)

    # Pad Cout to a multiple of 8 -> full-sublane, unmasked output stores.
    cout_p = _round_up(Cout, 8)
    if cout_p != Cout:
        w = jnp.pad(w, ((0, cout_p - Cout), (0, 0)))
        b = jnp.pad(b, ((0, cout_p - Cout),))
    b = b.reshape(cout_p, 1)

    t_hw, t_k = _pick_tiles(N, HW, Cin, cout_p)
    n_hw = pl.cdiv(HW, t_hw)

    if t_k == Cin:
        grid = (N, n_hw)
        in_specs = [
            # batch dim squeezed (None); kernel sees (Cin, t_hw)
            pl.BlockSpec((None, Cin, t_hw), lambda n, j: (n, 0, j)),
            # weight / bias: constant index maps -> fetched once, resident
            pl.BlockSpec((cout_p, Cin), lambda n, j: (0, 0)),
            pl.BlockSpec((cout_p, 1), lambda n, j: (0, 0)),
        ]
        out_specs = pl.BlockSpec((None, cout_p, t_hw), lambda n, j: (n, 0, j))
        scratch = []
        kernel = _merge_kernel
        dims = ("parallel", "parallel")
    else:
        n_k = pl.cdiv(Cin, t_k)
        grid = (N, n_hw, n_k)
        in_specs = [
            pl.BlockSpec((None, t_k, t_hw), lambda n, j, k: (n, k, j)),
            pl.BlockSpec((cout_p, t_k), lambda n, j, k: (0, k)),
            pl.BlockSpec((cout_p, 1), lambda n, j, k: (0, 0)),
        ]
        out_specs = pl.BlockSpec((None, cout_p, t_hw),
                                 lambda n, j, k: (n, 0, j))
        scratch = [pltpu.VMEM((cout_p, t_hw), jnp.float32)]
        kernel = _merge_kernel_kacc
        dims = ("parallel", "parallel", "arbitrary")

    cost = pl.CostEstimate(
        flops=2 * N * Cout * Cin * HW,
        bytes_accessed=4 * (N * Cin * HW + N * cout_p * HW
                            + cout_p * Cin + cout_p),
        transcendentals=0,
    )

    out = pl.pallas_call(
        kernel,
        out_shape=jax.ShapeDtypeStruct((N, cout_p, HW), x.dtype),
        grid_spec=pltpu.PrefetchScalarGridSpec(
            num_scalar_prefetch=0,
            grid=grid,
            in_specs=in_specs,
            out_specs=out_specs,
            scratch_shapes=scratch,
        ),
        compiler_params=pltpu.CompilerParams(
            dimension_semantics=dims,
            vmem_limit_bytes=_VMEM_LIMIT),
        cost_estimate=cost,
    )(x, w, b)

    if cout_p != Cout:
        out = out[:, :Cout, :]
    return out.reshape(N, Cout, H, W)


if __name__ == "__main__":
    # Small shapes consistent with Merge(x_dim, y_dim) on an NCHW feature map.
    N, Cin, H, W = 2, 4, 16, 16
    Cout = 8

    key = jax.random.PRNGKey(0)
    kx, kw, kb = jax.random.split(key, 3)

    x = jax.random.normal(kx, (N, Cin, H, W), dtype=jnp.float32)
    # Deterministic synthetic parameters (Conv2d(x_dim, y_dim, 1) weight+bias).
    weight = jax.random.normal(kw, (Cout, Cin), dtype=jnp.float32) * 0.1
    bias = jax.random.normal(kb, (Cout,), dtype=jnp.float32) * 0.1

    y = merge_forward(x, weight, bias)
    jax.block_until_ready(y)

    # Pure-JAX reference (same math as the PyTorch 1x1 conv).
    ref = jnp.einsum("nchw,oc->nohw", x, weight) + bias[None, :, None, None]
    assert y.shape == (N, Cout, H, W)
    assert jnp.allclose(y, ref, atol=1e-4, rtol=1e-4), "mismatch vs reference"

    print("KERNEL_OK")
</pallas_src>

<mosaic_0001>
module attributes {stable_mosaic.version = 11 : i64} {
  func.func @_merge_kernel(%arg0: i32, %arg1: i32, %arg2: memref<1x4x256xf32, #tpu.memory_space<vmem>>, %arg3: memref<8x4xf32, #tpu.memory_space<vmem>>, %arg4: memref<8x1xf32, #tpu.memory_space<vmem>>, %arg5: memref<1x8x256xf32, #tpu.memory_space<vmem>>) attributes {dimension_semantics = [#tpu.dimension_semantics<parallel>, #tpu.dimension_semantics<parallel>], iteration_bounds = array<i64: 2, 1>, scalar_prefetch = 0 : i64, scratch_operands = 0 : i64, tpu.core_type = #tpu.core_type<tc>, window_params = [{transform_indices = @transform_0, window_bounds = array<i64: 1, 4, 256>}, {pipeline_mode = #tpu.pipeline_mode<synchronous>, transform_indices = @transform_1, window_bounds = array<i64: 8, 4>}, {pipeline_mode = #tpu.pipeline_mode<synchronous>, transform_indices = @transform_2, window_bounds = array<i64: 8, 1>}, {transform_indices = @transform_3, window_bounds = array<i64: 1, 8, 256>}]} {
    %c0 = arith.constant 0 : index
    %c0_0 = arith.constant 0 : index
    %0 = vector.load %arg3[%c0, %c0_0] : memref<8x4xf32, #tpu.memory_space<vmem>>, vector<8x4xf32>
    %c0_1 = arith.constant 0 : index
    %c0_2 = arith.constant 0 : index
    %c0_3 = arith.constant 0 : index
    %1 = vector.load %arg2[%c0_1, %c0_2, %c0_3] : memref<1x4x256xf32, #tpu.memory_space<vmem>>, vector<1x4x256xf32>
    %2 = vector.shape_cast %1 : vector<1x4x256xf32> to vector<4x256xf32>
    %cst = arith.constant dense<0.000000e+00> : vector<8x256xf32>
    %3 = tpu.matmul %0, %2, %cst {dimension_numbers = #tpu.dot_dimension_numbers<[1], [0], [0], [1], [0, 0, 1, 1], [], []>} : vector<8x4xf32>, vector<4x256xf32>, vector<8x256xf32> -> vector<8x256xf32>
    %c0_4 = arith.constant 0 : index
    %c0_5 = arith.constant 0 : index
    %4 = vector.load %arg4[%c0_4, %c0_5] : memref<8x1xf32, #tpu.memory_space<vmem>>, vector<8x1xf32>
    %5 = vector.broadcast %4 : vector<8x1xf32> to vector<8x256xf32>
    %6 = arith.addf %3, %5 : vector<8x256xf32>
    %c0_6 = arith.constant 0 : index
    %c0_7 = arith.constant 0 : index
    %c0_8 = arith.constant 0 : index
    %7 = vector.load %arg5[%c0_6, %c0_7, %c0_8] : memref<1x8x256xf32, #tpu.memory_space<vmem>>, vector<1x8x256xf32>
    %8 = vector.shape_cast %7 : vector<1x8x256xf32> to vector<8x256xf32>
    %9 = vector.shape_cast %6 : vector<8x256xf32> to vector<1x8x256xf32>
    tpu.vector_store %arg5[%c0_6, %c0_7, %c0_8], %9 {strides = array<i32>} : memref<1x8x256xf32, #tpu.memory_space<vmem>>, vector<1x8x256xf32>,
    return
  }
  func.func @transform_0(%arg0: i32, %arg1: i32) -> (i32, i32, i32) {
    %c0_i32 = arith.constant 0 : i32
    %c0_i32_0 = arith.constant 0 : i32
    return %arg0, %c0_i32, %arg1 : i32, i32, i32
  }
  func.func @transform_1(%arg0: i32, %arg1: i32) -> (i32, i32) {
    %c0_i32 = arith.constant 0 : i32
    %c0_i32_0 = arith.constant 0 : i32
    %c0_i32_1 = arith.constant 0 : i32
    return %c0_i32, %c0_i32_0 : i32, i32
  }
  func.func @transform_2(%arg0: i32, %arg1: i32) -> (i32, i32) {
    %c0_i32 = arith.constant 0 : i32
    %c0_i32_0 = arith.constant 0 : i32
    %c0_i32_1 = arith.constant 0 : i32
    return %c0_i32, %c0_i32_0 : i32, i32
  }
  func.func @transform_3(%arg0: i32, %arg1: i32) -> (i32, i32, i32) {
    %c0_i32 = arith.constant 0 : i32
    %c0_i32_0 = arith.constant 0 : i32
    return %arg0, %c0_i32, %arg1 : i32, i32, i32
  }
}

</mosaic_0001>

<bundles_post_ra>
// kernel: merge_forward.1
= control target key start
LH: loop header
LB: loop body
LE: loop exit
PB: predicated region body
PF: predicated region fallthrough
CT: control target
= control target key end

     0   :  { %s479_s12 = smov 0   ;;  %s481_s13 = smov 0   ;;  %s518_s0 = inlined_call_operand.vmem [shape: f32[2,4,256], index: 0, kind: input, shape index: {}]   ;;  %s519_s1 = inlined_call_operand.vmem [shape: f32[8,4], index: 1, kind: input, shape index: {}]   ;;  %s520_s2 = inlined_call_operand.vmem [shape: f32[8,1], index: 2, kind: input, shape index: {}]   ;;  %s521_s3 = inlined_call_operand.vmem [shape: f32[2,8,256], index: 3, kind: output, shape index: {}]  }
   0x1   :  { %s483_s14 = smov 0  }
   0x2 LB: > { %s25_s15 = sadd.s32 1, %s451_s13  ;;  %p393_p0 = scmp.ge.s32.totalorder %s455_s14, 1  ;;  %s455_s14 = sphi %s483_s14, %s13_s14   ;;  %s451_s13 = sphi %s481_s13, %s523_s13   ;;  %s447_s12 = sphi %s479_s12, %s522_s12  }
   0x3   : > { %p27_p1 = scmp.ge.s32.totalorder %s25_s15, 2  ;;  %p158_p2 = scmp.lt.s32.totalorder %s455_s14, 3 }
   0x5   : > { %s525_s15 = smov (%p27_p1, %s25_s15), 0  ;;  %p159_p3 = pnand %p393_p0, %p158_p2 }
   0x6   : > { %p191_p4 = scmp.lt.s32.totalorder (!%p159_p3), %s447_s12, 1 }
   0x7   : > { %162 = sbr.rel (%p159_p3) target bundleno = 218 (0xda), region = 32 }
   0xc   : > { %v457_v0 = vmov 0.0   ;;  %v458_v1 = vmov 0   ;;  %v212_v2 = vld [vmem:[%s520_s2] sm:$0xff]  ;;  %s527_s12 = smov (!%p191_p4, %s447_s12), 1  ;;  %vm224_vm0 = vcmask 1043456   ;;  %vm220_vm1 = vcmask 31744  }
   0xd   : > { %293 = vmatprep.mubr.f32.mxu0 %v457_v0  ;;  %431 = vset.pattern.permute.xlu0 %v458_v1  ;;  %s403_s18 = sshll.u32 %s527_s12, 3  ;;  %v210_v5 = vld [vmem:[%s519_s1] sm:$0xff]  ;;  %s404_s24 = sshll.u32 %s527_s12, 4 }
   0xe   : > { %215 = vperm.xlu0 %431, %v212_v2   ;;  %s198_s21 = scalar_lea.vmem %s518_s0, %s403_s18  ;;  %s208_s27 = scalar_lea.vmem %s521_s3, %s404_s24 }
   0xf   : > { %v211_v3 = vld [vmem:[%s198_s21] sm:$0xff] }
  0x10   : > { %v219_v4 = vcombine.high %v211_v3, %v211_v3 }
  0x12   : > { %398 = vmatprep.subr.msk.mxu0 %vm224_vm0, %v219_v4 }
  0x13   : > { %399 = vmatpush1.msk.msra.mxu0 %vm224_vm0, %v211_v3 }
  0x14   : > { %400 = vmatmul.mubr.msk.f32.vlgmr.msra.gmra.mxu0 %vm220_vm1, %v210_v5 }
  0x89   : > { %v216_v6 = vpop.permute.xlu0 %215 }
  0xd4   : > { %v295_v7 = vpop.f32.mrf.mxu0 }
  0xd5   : > { %v296_v8 = vadd.f32 %v295_v7, %v216_v6 }
  0xd6   : > { %v297_v9 = vpop.f32.mrf.mxu0 }
  0xd7   : > { %300 = vst [vmem:[%s208_s27] sm:$0xff] %v296_v8  ;;  %v298_v10 = vadd.f32 %v297_v9, %v216_v6 }
  0xd9   : > { %301 = vst [vmem:[%s208_s27 + $0x8] sm:$0xff] %v298_v10 }
  0xda PF: > { %s13_s14 = sadd.s32 1, %s455_s14   ;;  %s522_s12 = smov %s451_s13 }
  0xdb   : > { %p10_p5 = scmp.ge.s32.totalorder %s13_s14, 4   ;;  %s523_s13 = smov %s525_s15 }
  0xdd   :  { %12 = sbr.rel (!%p10_p5) target bundleno = 2 (0x2), region = 62 }

</bundles_post_ra>
